<compile_context>
chip_gen: v7x
topology: tpu7x:2x2x1
jax: 0.10.0
libtpu: 0.0.40
codegen_flags: <defaults>
</compile_context>

<pallas_src>
import functools

import jax
import jax.numpy as jnp
from jax.experimental import pallas as pl
from jax.experimental.pallas import tpu as pltpu


# Below this, pallas_call dispatch + DMA setup dominates; XLA's fused
# elementwise add is strictly faster.
_SMALL_INPUT_BYTES = 256 * 1024

# Per-buffer block target (~4 MiB). 4 buffers x 4 MiB = 16 MiB, inside the
# 32 MiB scoped-VMEM limit we request explicitly (safe on v5e/v6e/v7x).
_BLOCK_TARGET_BYTES = 4 * 1024 * 1024
_VMEM_LIMIT_BYTES = 32 * 1024 * 1024

# Single-block fallback cap when the row count can't be tiled cleanly.
_MAX_SINGLE_BLOCK_BYTES = 8 * 1024 * 1024


def add_one_kernel(x_ref, o_ref):
    # Purely elementwise hot path on the whole VMEM tile (VPU, mem-bound).
    o_ref[...] = x_ref[...] + jnp.asarray(1, dtype=o_ref.dtype)


def _sublane_pack(dtype) -> int:
    # Sub-32-bit dtypes pack along sublanes: (8,128) f32, (16,128) bf16,
    # (32,128) int8/fp8.
    itemsize = jnp.dtype(dtype).itemsize
    return {1: 32, 2: 16}.get(itemsize, 8)


def _choose_lanes(total: int, sub: int):
    """Largest multiple of 128 that divides `total`, preferring rows % sub == 0."""
    fallback = None
    for lanes in range(4096, 0, -128):
        if total % lanes == 0:
            rows = total // lanes
            if rows % sub == 0:
                return lanes
            if fallback is None:
                fallback = lanes
    return fallback  # None if total is not a multiple of 128


def _add_one_pallas_2d(x2d, block_rows: int):
    rows, lanes = x2d.shape
    grid_rows = pl.cdiv(rows, block_rows)
    return pl.pallas_call(
        add_one_kernel,
        out_shape=jax.ShapeDtypeStruct((rows, lanes), x2d.dtype),
        grid=(grid_rows,),
        in_specs=[pl.BlockSpec((block_rows, lanes), lambda i: (i, 0))],
        out_specs=pl.BlockSpec((block_rows, lanes), lambda i: (i, 0)),
        # Same shape/dtype in and out: donate the flattened input buffer so no
        # second HBM allocation is needed (XLA copies defensively if the caller
        # did not actually donate).
        input_output_aliases={0: 0},
        compiler_params=pltpu.CompilerParams(
            # Independent tiles: lets v7x shard the grid across its 2 TCs;
            # neutral on v5e/v6e.
            dimension_semantics=("parallel",),
            vmem_limit_bytes=_VMEM_LIMIT_BYTES,
        ),
    )(x2d)


def pt_module_forward(x, *, force_pallas: bool = False):
    """Equivalent of:
        output = [x[i] + 1 for i in range(x.shape[0])]
        return stack(output)
    i.e. x + 1, computed by a single Pallas kernel over a lane-dense 2D view.
    `force_pallas=True` skips the small-input XLA fast path (used by the demo
    so the kernel is actually exercised).
    """
    dtype = x.dtype
    total = x.size
    itemsize = jnp.dtype(dtype).itemsize
    nbytes = total * itemsize

    one = jnp.asarray(1, dtype=dtype)

    # Small-input fast path: launch overhead dwarfs the data movement.
    if not force_pallas and nbytes < _SMALL_INPUT_BYTES:
        return x + one

    sub = _sublane_pack(dtype)
    lanes = _choose_lanes(total, sub)
    if lanes is None:
        # TODO(synk): handle ragged totals (not a multiple of 128) with an
        # in-kernel masked edge block instead of this XLA fallback.
        return x + one

    rows = total // lanes
    x2d = jnp.reshape(x, (rows, lanes))  # pure view-style reshape, no pad

    if rows % sub != 0 or rows < 2 * sub:
        # Rows can't be tiled on sublane boundaries (or too few of them):
        # run a single full-extent block (grid=(1,)) — valid for any shape.
        if rows * lanes * itemsize > _MAX_SINGLE_BLOCK_BYTES:
            # TODO(synk): very large arrays with awkward row counts would need
            # an in-kernel masked edge block; fall back to XLA for now.
            return x + one
        block_rows = rows
    else:
        # ~4 MiB per block buffer, rounded to sublane multiples.
        target_rows = max(sub, _BLOCK_TARGET_BYTES // (lanes * itemsize))
        target_rows = max(sub, (target_rows // sub) * sub)
        # Cap so there are at least 2 grid steps when possible, letting v7x's
        # two TensorCores both pull HBM bandwidth.
        half_rows = max(sub, ((rows // 2) // sub) * sub)
        block_rows = min(target_rows, half_rows)

    out2d = _add_one_pallas_2d(x2d, block_rows)
    return jnp.reshape(out2d, x.shape)


if __name__ == "__main__":
    key = jax.random.PRNGKey(0)
    x = jax.random.normal(key, (2, 4, 16, 16), dtype=jnp.float32)

    # Reference (pure JAX) of the PyTorch semantics, computed up front.
    ref = x + 1.0

    # Exercise the Pallas kernel (force past the small-input fast path).
    fwd = jax.jit(functools.partial(pt_module_forward, force_pallas=True))
    out = fwd(x)
    jax.block_until_ready(out)

    assert out.shape == x.shape and out.dtype == x.dtype
    assert jnp.allclose(out, ref), "mismatch vs reference (pallas path)"

    # Also check the auto path (small input -> XLA fast path) for completeness.
    out_auto = pt_module_forward(x)
    jax.block_until_ready(out_auto)
    assert jnp.allclose(out_auto, ref), "mismatch vs reference (auto path)"

    print("KERNEL_OK")
</pallas_src>

<mosaic_0001>
module attributes {stable_mosaic.version = 11 : i64} {
  func.func @add_one_kernel(%arg0: i32, %arg1: memref<8x256xf32, #tpu.memory_space<vmem>>, %arg2: memref<8x256xf32, #tpu.memory_space<vmem>>) attributes {dimension_semantics = [#tpu.dimension_semantics<parallel>], iteration_bounds = array<i64: 1>, scalar_prefetch = 0 : i64, scratch_operands = 0 : i64, tpu.core_type = #tpu.core_type<tc>, window_params = [{transform_indices = @transform_0, window_bounds = array<i64: 8, 256>}, {transform_indices = @transform_1, window_bounds = array<i64: 8, 256>}]} {
    %c0 = arith.constant 0 : index
    %c0_0 = arith.constant 0 : index
    %0 = vector.load %arg1[%c0, %c0_0] : memref<8x256xf32, #tpu.memory_space<vmem>>, vector<8x256xf32>
    %cst = arith.constant 1.000000e+00 : f32
    %1 = vector.broadcast %cst : f32 to vector<8x256xf32>
    %2 = arith.addf %0, %1 : vector<8x256xf32>
    %c0_1 = arith.constant 0 : index
    %c0_2 = arith.constant 0 : index
    %3 = vector.load %arg2[%c0_1, %c0_2] : memref<8x256xf32, #tpu.memory_space<vmem>>, vector<8x256xf32>
    tpu.vector_store %arg2[%c0_1, %c0_2], %2 {strides = array<i32>} : memref<8x256xf32, #tpu.memory_space<vmem>>, vector<8x256xf32>,
    return
  }
  func.func @transform_0(%arg0: i32) -> (i32, i32) {
    %c0_i32 = arith.constant 0 : i32
    %c0_i32_0 = arith.constant 0 : i32
    return %arg0, %c0_i32 : i32, i32
  }
  func.func @transform_1(%arg0: i32) -> (i32, i32) {
    %c0_i32 = arith.constant 0 : i32
    %c0_i32_0 = arith.constant 0 : i32
    return %arg0, %c0_i32 : i32, i32
  }
}

</mosaic_0001>

<bundles_post_ra>
// kernel: pt_module_forward.1
= control target key start
LH: loop header
LB: loop body
LE: loop exit
PB: predicated region body
PF: predicated region fallthrough
CT: control target
= control target key end

     0   :  { %s40_s0 = inlined_call_operand.vmem [shape: f32[8,256], index: 0, kind: input, shape index: {}, may-alias: {0,1}]   ;;  %s41_s1 = inlined_call_operand.vmem [shape: f32[8,256], index: 1, kind: output, shape index: {}, may-alias: {0,1}]  }
   0x1   :  { %v8_v0 = vld [vmem:[%s40_s0] sm:$0xff]  ;;  %v9_v1 = vld [vmem:[%s40_s0 + $0x8] sm:$0xff] }
   0x2   :  { %v10_v2 = vadd.f32 1.0, %v8_v0  ;;  %v11_v3 = vadd.f32 1.0, %v9_v1 }
   0x4   :  { %12 = vst [vmem:[%s41_s1] sm:$0xff] %v10_v2  ;;  %13 = vst [vmem:[%s41_s1 + $0x8] sm:$0xff] %v11_v3 }

</bundles_post_ra>
